<compile_context>
chip_gen: v6e
topology: v6e:2x2x1
jax: 0.10.0
libtpu: 0.0.40
codegen_flags: <defaults>
</compile_context>

<pallas_src>
import jax
import jax.numpy as jnp
import numpy as np
from jax.experimental import pallas as pl
from jax.experimental.pallas import tpu as pltpu


MAX_TILE_B = 512   # fits easily in VMEM (activations <= 512x256 f32 = 512 KiB)
OUT_PAD = 128      # lane-dense padded width of the final (2-wide) output


def mlp_kernel(slopes_ref,                       # SMEM (3,)  PReLU slopes
               x_ref,                            # [TB, 6]    f32
               w1_ref, b1_ref,                   # [6,256]  f32,  [1,256] f32
               w2_ref, b2_ref,                   # [256,128] bf16, [1,128] f32
               w3_ref, b3_ref,                   # [128,64]  bf16, [1,64]  f32
               w4_ref, b4_ref,                   # [64,128]  bf16, [1,128] f32
               o_ref):                           # [TB, 128] f32
    a1 = slopes_ref[0]
    a2 = slopes_ref[1]
    a3 = slopes_ref[2]

    x = x_ref[...]                                               # [TB, 6] f32

    # ---- Layer 1: Linear(6, 256) as VPU broadcast-FMAs (K=6 wastes the MXU).
    h = x[:, 0:1] * w1_ref[0:1, :] + b1_ref[...]
    for k in range(1, 6):
        h = h + x[:, k:k + 1] * w1_ref[k:k + 1, :]
    h = jnp.where(h >= 0, h, a1 * h)                             # PReLU
    # Dropout(0.1): identity in eval mode.

    # ---- Layer 2: Linear(256, 128) on the MXU, bf16 operands / f32 accumulate.
    h = jnp.dot(h.astype(jnp.bfloat16), w2_ref[...],
                preferred_element_type=jnp.float32) + b2_ref[...]
    h = jnp.where(h >= 0, h, a2 * h)                             # PReLU
    # Dropout(0.1): identity in eval mode.

    # ---- Layer 3: Linear(128, 64).
    h = jnp.dot(h.astype(jnp.bfloat16), w3_ref[...],
                preferred_element_type=jnp.float32) + b3_ref[...]
    h = jnp.where(h >= 0, h, a3 * h)                             # PReLU

    # ---- Layer 4: Linear(64, 2) padded to 128 output lanes (lane-dense store).
    o_ref[...] = jnp.dot(h.astype(jnp.bfloat16), w4_ref[...],
                         preferred_element_type=jnp.float32) + b4_ref[...]


def net_forward(x, params):
    """x: [B, 6] float32 -> [B, 2] float32 logits."""
    B = x.shape[0]
    # Tile: multiple of 8 sublanes, capped; pad the batch up to it.
    tile_b = min(MAX_TILE_B, max(8, ((B + 7) // 8) * 8))
    nb = (B + tile_b - 1) // tile_b
    b_pad = nb * tile_b
    if b_pad != B:
        x = jnp.pad(x, ((0, b_pad - B), (0, 0)))

    smem = pl.BlockSpec(memory_space=pltpu.MemorySpace.SMEM)

    def const_spec(arr):
        # Full-array block, constant index_map -> stays VMEM-resident across steps.
        return pl.BlockSpec(arr.shape, lambda i: (0, 0))

    weight_args = (params["w1t"], params["b1"],
                   params["w2t"], params["b2"],
                   params["w3t"], params["b3"],
                   params["w4t"], params["b4"])

    flops = 2 * b_pad * (6 * 256 + 256 * 128 + 128 * 64 + 64 * OUT_PAD)
    weight_bytes = int(sum(int(np.prod(w.shape)) * w.dtype.itemsize
                           for w in weight_args))
    bytes_accessed = b_pad * 6 * 4 + b_pad * OUT_PAD * 4 + weight_bytes

    out_padded = pl.pallas_call(
        mlp_kernel,
        out_shape=jax.ShapeDtypeStruct((b_pad, OUT_PAD), jnp.float32),
        grid=(nb,),
        in_specs=[smem,                                            # PReLU slopes
                  pl.BlockSpec((tile_b, 6), lambda i: (i, 0)),     # x
                  *[const_spec(w) for w in weight_args]],          # weights/biases
        out_specs=pl.BlockSpec((tile_b, OUT_PAD), lambda i: (i, 0)),
        compiler_params=pltpu.CompilerParams(
            dimension_semantics=("parallel",)),
        cost_estimate=pl.CostEstimate(flops=flops,
                                      transcendentals=0,
                                      bytes_accessed=bytes_accessed),
    )(params["slopes"], x, *weight_args)

    return out_padded[:B, :2]


def init_params(key):
    """Deterministic init matching Net.reset_weights():
       kaiming_normal_(nonlinearity='relu', fan_in), bias = 0.01,
       PReLU slope = 0.25 (nn.PReLU default)."""
    dims = [(6, 256), (256, 128), (128, 64), (64, 2)]
    keys = jax.random.split(key, len(dims))
    params = {}
    for i, ((fan_in, fan_out), k) in enumerate(zip(dims, keys), start=1):
        std = np.sqrt(2.0 / fan_in)                      # kaiming normal, relu gain
        w = jax.random.normal(k, (fan_out, fan_in), jnp.float32) * std  # [out, in]
        wt = jnp.asarray(w.T)                                            # [in, out]
        b = jnp.full((1, fan_out), 0.01, jnp.float32)
        if i == 1:
            # Layer 1 stays f32 (computed on the VPU, not the MXU).
            params["w1t"] = wt
            params["b1"] = b
        elif i == 4:
            # Pad final layer to 128 output lanes for a lane-dense store.
            wt_pad = jnp.zeros((fan_in, OUT_PAD), jnp.float32).at[:, :fan_out].set(wt)
            b_pad = jnp.zeros((1, OUT_PAD), jnp.float32).at[:, :fan_out].set(b)
            params["w4t"] = wt_pad.astype(jnp.bfloat16)
            params["b4"] = b_pad
        else:
            params[f"w{i}t"] = wt.astype(jnp.bfloat16)
            params[f"b{i}"] = b
    params["slopes"] = jnp.full((3,), 0.25, jnp.float32)
    return params


def net_forward_ref(x, params):
    """Pure-JAX reference using the same bf16-operand / f32-accumulate math."""
    a1, a2, a3 = params["slopes"]
    h = x @ params["w1t"] + params["b1"]
    h = jnp.where(h >= 0, h, a1 * h)
    h = jnp.dot(h.astype(jnp.bfloat16), params["w2t"],
                preferred_element_type=jnp.float32) + params["b2"]
    h = jnp.where(h >= 0, h, a2 * h)
    h = jnp.dot(h.astype(jnp.bfloat16), params["w3t"],
                preferred_element_type=jnp.float32) + params["b3"]
    h = jnp.where(h >= 0, h, a3 * h)
    out = jnp.dot(h.astype(jnp.bfloat16), params["w4t"],
                  preferred_element_type=jnp.float32) + params["b4"]
    return out[:, :2]


if __name__ == "__main__":
    key = jax.random.PRNGKey(0)
    pkey, xkey = jax.random.split(key)
    params = init_params(pkey)

    B = 8
    x = jax.random.normal(xkey, (B, 6), jnp.float32)

    out = net_forward(x, params)
    out = jax.block_until_ready(out)

    ref = net_forward_ref(x, params)
    np.testing.assert_allclose(np.asarray(out), np.asarray(ref),
                               rtol=1e-2, atol=1e-2)
    assert out.shape == (B, 2) and out.dtype == jnp.float32
    print("KERNEL_OK")
</pallas_src>

<mosaic_0001>
module attributes {stable_mosaic.version = 11 : i64} {
  func.func @mlp_kernel(%arg0: i32, %arg1: memref<3xf32, #tpu.memory_space<smem>>, %arg2: memref<8x6xf32, #tpu.memory_space<vmem>>, %arg3: memref<6x256xf32, #tpu.memory_space<vmem>>, %arg4: memref<1x256xf32, #tpu.memory_space<vmem>>, %arg5: memref<256x128xbf16, #tpu.memory_space<vmem>>, %arg6: memref<1x128xf32, #tpu.memory_space<vmem>>, %arg7: memref<128x64xbf16, #tpu.memory_space<vmem>>, %arg8: memref<1x64xf32, #tpu.memory_space<vmem>>, %arg9: memref<64x128xbf16, #tpu.memory_space<vmem>>, %arg10: memref<1x128xf32, #tpu.memory_space<vmem>>, %arg11: memref<8x128xf32, #tpu.memory_space<vmem>>) attributes {dimension_semantics = [#tpu.dimension_semantics<parallel>], iteration_bounds = array<i64: 1>, scalar_prefetch = 0 : i64, scratch_operands = 0 : i64, tpu.core_type = #tpu.core_type<tc>, window_params = [{transform_indices = @transform_0, window_bounds = array<i64: 3>}, {transform_indices = @transform_1, window_bounds = array<i64: 8, 6>}, {pipeline_mode = #tpu.pipeline_mode<synchronous>, transform_indices = @transform_2, window_bounds = array<i64: 6, 256>}, {pipeline_mode = #tpu.pipeline_mode<synchronous>, transform_indices = @transform_3, window_bounds = array<i64: 1, 256>}, {pipeline_mode = #tpu.pipeline_mode<synchronous>, transform_indices = @transform_4, window_bounds = array<i64: 256, 128>}, {pipeline_mode = #tpu.pipeline_mode<synchronous>, transform_indices = @transform_5, window_bounds = array<i64: 1, 128>}, {pipeline_mode = #tpu.pipeline_mode<synchronous>, transform_indices = @transform_6, window_bounds = array<i64: 128, 64>}, {pipeline_mode = #tpu.pipeline_mode<synchronous>, transform_indices = @transform_7, window_bounds = array<i64: 1, 64>}, {pipeline_mode = #tpu.pipeline_mode<synchronous>, transform_indices = @transform_8, window_bounds = array<i64: 64, 128>}, {pipeline_mode = #tpu.pipeline_mode<synchronous>, transform_indices = @transform_9, window_bounds = array<i64: 1, 128>}, {transform_indices = @transform_10, window_bounds = array<i64: 8, 128>}]} {
    %c0 = arith.constant 0 : index
    %0 = memref.load %arg1[%c0] : memref<3xf32, #tpu.memory_space<smem>>
    %c1 = arith.constant 1 : index
    %1 = memref.load %arg1[%c1] : memref<3xf32, #tpu.memory_space<smem>>
    %c2 = arith.constant 2 : index
    %2 = memref.load %arg1[%c2] : memref<3xf32, #tpu.memory_space<smem>>
    %c0_0 = arith.constant 0 : index
    %c0_1 = arith.constant 0 : index
    %3 = vector.load %arg2[%c0_0, %c0_1] : memref<8x6xf32, #tpu.memory_space<vmem>>, vector<8x6xf32>
    %4 = vector.extract_strided_slice %3 {offsets = [0, 0], sizes = [8, 1], strides = [1, 1]} : vector<8x6xf32> to vector<8x1xf32>
    %c0_2 = arith.constant 0 : index
    %c0_3 = arith.constant 0 : index
    %5 = vector.load %arg3[%c0_2, %c0_3] : memref<6x256xf32, #tpu.memory_space<vmem>>, vector<1x256xf32>
    %6 = vector.broadcast %4 : vector<8x1xf32> to vector<8x256xf32>
    %7 = vector.broadcast %5 : vector<1x256xf32> to vector<8x256xf32>
    %8 = arith.mulf %6, %7 : vector<8x256xf32>
    %c0_4 = arith.constant 0 : index
    %c0_5 = arith.constant 0 : index
    %9 = vector.load %arg4[%c0_4, %c0_5] : memref<1x256xf32, #tpu.memory_space<vmem>>, vector<1x256xf32>
    %10 = vector.broadcast %9 : vector<1x256xf32> to vector<8x256xf32>
    %11 = arith.addf %8, %10 : vector<8x256xf32>
    %12 = vector.extract_strided_slice %3 {offsets = [0, 1], sizes = [8, 1], strides = [1, 1]} : vector<8x6xf32> to vector<8x1xf32>
    %c1_6 = arith.constant 1 : index
    %c0_7 = arith.constant 0 : index
    %13 = vector.load %arg3[%c1_6, %c0_7] : memref<6x256xf32, #tpu.memory_space<vmem>>, vector<1x256xf32>
    %14 = vector.broadcast %12 : vector<8x1xf32> to vector<8x256xf32>
    %15 = vector.broadcast %13 : vector<1x256xf32> to vector<8x256xf32>
    %16 = arith.mulf %14, %15 : vector<8x256xf32>
    %17 = arith.addf %11, %16 : vector<8x256xf32>
    %18 = vector.extract_strided_slice %3 {offsets = [0, 2], sizes = [8, 1], strides = [1, 1]} : vector<8x6xf32> to vector<8x1xf32>
    %c2_8 = arith.constant 2 : index
    %c0_9 = arith.constant 0 : index
    %19 = vector.load %arg3[%c2_8, %c0_9] : memref<6x256xf32, #tpu.memory_space<vmem>>, vector<1x256xf32>
    %20 = vector.broadcast %18 : vector<8x1xf32> to vector<8x256xf32>
    %21 = vector.broadcast %19 : vector<1x256xf32> to vector<8x256xf32>
    %22 = arith.mulf %20, %21 : vector<8x256xf32>
    %23 = arith.addf %17, %22 : vector<8x256xf32>
    %24 = vector.extract_strided_slice %3 {offsets = [0, 3], sizes = [8, 1], strides = [1, 1]} : vector<8x6xf32> to vector<8x1xf32>
    %c3 = arith.constant 3 : index
    %c0_10 = arith.constant 0 : index
    %25 = vector.load %arg3[%c3, %c0_10] : memref<6x256xf32, #tpu.memory_space<vmem>>, vector<1x256xf32>
    %26 = vector.broadcast %24 : vector<8x1xf32> to vector<8x256xf32>
    %27 = vector.broadcast %25 : vector<1x256xf32> to vector<8x256xf32>
    %28 = arith.mulf %26, %27 : vector<8x256xf32>
    %29 = arith.addf %23, %28 : vector<8x256xf32>
    %30 = vector.extract_strided_slice %3 {offsets = [0, 4], sizes = [8, 1], strides = [1, 1]} : vector<8x6xf32> to vector<8x1xf32>
    %c4 = arith.constant 4 : index
    %c0_11 = arith.constant 0 : index
    %31 = vector.load %arg3[%c4, %c0_11] : memref<6x256xf32, #tpu.memory_space<vmem>>, vector<1x256xf32>
    %32 = vector.broadcast %30 : vector<8x1xf32> to vector<8x256xf32>
    %33 = vector.broadcast %31 : vector<1x256xf32> to vector<8x256xf32>
    %34 = arith.mulf %32, %33 : vector<8x256xf32>
    %35 = arith.addf %29, %34 : vector<8x256xf32>
    %36 = vector.extract_strided_slice %3 {offsets = [0, 5], sizes = [8, 1], strides = [1, 1]} : vector<8x6xf32> to vector<8x1xf32>
    %c5 = arith.constant 5 : index
    %c0_12 = arith.constant 0 : index
    %37 = vector.load %arg3[%c5, %c0_12] : memref<6x256xf32, #tpu.memory_space<vmem>>, vector<1x256xf32>
    %38 = vector.broadcast %36 : vector<8x1xf32> to vector<8x256xf32>
    %39 = vector.broadcast %37 : vector<1x256xf32> to vector<8x256xf32>
    %40 = arith.mulf %38, %39 : vector<8x256xf32>
    %41 = arith.addf %35, %40 : vector<8x256xf32>
    %cst = arith.constant 0.000000e+00 : f32
    %42 = vector.broadcast %cst : f32 to vector<8x256xf32>
    %43 = arith.cmpf oge, %41, %42 : vector<8x256xf32>
    %44 = vector.broadcast %0 : f32 to vector<8x256xf32>
    %45 = arith.mulf %44, %41 : vector<8x256xf32>
    %46 = arith.select %43, %41, %45 : vector<8x256xi1>, vector<8x256xf32>
    %47 = arith.truncf %46 : vector<8x256xf32> to vector<8x256xbf16>
    %c0_13 = arith.constant 0 : index
    %c0_14 = arith.constant 0 : index
    %48 = vector.load %arg5[%c0_13, %c0_14] : memref<256x128xbf16, #tpu.memory_space<vmem>>, vector<256x128xbf16>
    %cst_15 = arith.constant dense<0.000000e+00> : vector<8x128xf32>
    %49 = tpu.matmul %47, %48, %cst_15 {dimension_numbers = #tpu.dot_dimension_numbers<[1], [0], [0], [1], [0, 0, 1, 1], [], []>} : vector<8x256xbf16>, vector<256x128xbf16>, vector<8x128xf32> -> vector<8x128xf32>
    %c0_16 = arith.constant 0 : index
    %c0_17 = arith.constant 0 : index
    %50 = vector.load %arg6[%c0_16, %c0_17] : memref<1x128xf32, #tpu.memory_space<vmem>>, vector<1x128xf32>
    %51 = vector.broadcast %50 : vector<1x128xf32> to vector<8x128xf32>
    %52 = arith.addf %49, %51 : vector<8x128xf32>
    %cst_18 = arith.constant 0.000000e+00 : f32
    %53 = vector.broadcast %cst_18 : f32 to vector<8x128xf32>
    %54 = arith.cmpf oge, %52, %53 : vector<8x128xf32>
    %55 = vector.broadcast %1 : f32 to vector<8x128xf32>
    %56 = arith.mulf %55, %52 : vector<8x128xf32>
    %57 = arith.select %54, %52, %56 : vector<8x128xi1>, vector<8x128xf32>
    %58 = arith.truncf %57 : vector<8x128xf32> to vector<8x128xbf16>
    %c0_19 = arith.constant 0 : index
    %c0_20 = arith.constant 0 : index
    %59 = vector.load %arg7[%c0_19, %c0_20] : memref<128x64xbf16, #tpu.memory_space<vmem>>, vector<128x64xbf16>
    %cst_21 = arith.constant dense<0.000000e+00> : vector<8x64xf32>
    %60 = tpu.matmul %58, %59, %cst_21 {dimension_numbers = #tpu.dot_dimension_numbers<[1], [0], [0], [1], [0, 0, 1, 1], [], []>} : vector<8x128xbf16>, vector<128x64xbf16>, vector<8x64xf32> -> vector<8x64xf32>
    %c0_22 = arith.constant 0 : index
    %c0_23 = arith.constant 0 : index
    %61 = vector.load %arg8[%c0_22, %c0_23] : memref<1x64xf32, #tpu.memory_space<vmem>>, vector<1x64xf32>
    %62 = vector.broadcast %61 : vector<1x64xf32> to vector<8x64xf32>
    %63 = arith.addf %60, %62 : vector<8x64xf32>
    %cst_24 = arith.constant 0.000000e+00 : f32
    %64 = vector.broadcast %cst_24 : f32 to vector<8x64xf32>
    %65 = arith.cmpf oge, %63, %64 : vector<8x64xf32>
    %66 = vector.broadcast %2 : f32 to vector<8x64xf32>
    %67 = arith.mulf %66, %63 : vector<8x64xf32>
    %68 = arith.select %65, %63, %67 : vector<8x64xi1>, vector<8x64xf32>
    %69 = arith.truncf %68 : vector<8x64xf32> to vector<8x64xbf16>
    %c0_25 = arith.constant 0 : index
    %c0_26 = arith.constant 0 : index
    %70 = vector.load %arg9[%c0_25, %c0_26] : memref<64x128xbf16, #tpu.memory_space<vmem>>, vector<64x128xbf16>
    %cst_27 = arith.constant dense<0.000000e+00> : vector<8x128xf32>
    %71 = tpu.matmul %69, %70, %cst_27 {dimension_numbers = #tpu.dot_dimension_numbers<[1], [0], [0], [1], [0, 0, 1, 1], [], []>} : vector<8x64xbf16>, vector<64x128xbf16>, vector<8x128xf32> -> vector<8x128xf32>
    %c0_28 = arith.constant 0 : index
    %c0_29 = arith.constant 0 : index
    %72 = vector.load %arg10[%c0_28, %c0_29] : memref<1x128xf32, #tpu.memory_space<vmem>>, vector<1x128xf32>
    %73 = vector.broadcast %72 : vector<1x128xf32> to vector<8x128xf32>
    %74 = arith.addf %71, %73 : vector<8x128xf32>
    %c0_30 = arith.constant 0 : index
    %c0_31 = arith.constant 0 : index
    %75 = vector.load %arg11[%c0_30, %c0_31] : memref<8x128xf32, #tpu.memory_space<vmem>>, vector<8x128xf32>
    tpu.vector_store %arg11[%c0_30, %c0_31], %74 {strides = array<i32>} : memref<8x128xf32, #tpu.memory_space<vmem>>, vector<8x128xf32>,
    return
  }
  func.func @transform_0(%arg0: i32) -> i32 {
    %c0_i32 = arith.constant 0 : i32
    %c0_i32_0 = arith.constant 0 : i32
    return %c0_i32 : i32
  }
  func.func @transform_1(%arg0: i32) -> (i32, i32) {
    %c0_i32 = arith.constant 0 : i32
    %c0_i32_0 = arith.constant 0 : i32
    return %arg0, %c0_i32 : i32, i32
  }
  func.func @transform_2(%arg0: i32) -> (i32, i32) {
    %c0_i32 = arith.constant 0 : i32
    %c0_i32_0 = arith.constant 0 : i32
    %c0_i32_1 = arith.constant 0 : i32
    return %c0_i32, %c0_i32_0 : i32, i32
  }
  func.func @transform_3(%arg0: i32) -> (i32, i32) {
    %c0_i32 = arith.constant 0 : i32
    %c0_i32_0 = arith.constant 0 : i32
    %c0_i32_1 = arith.constant 0 : i32
    return %c0_i32, %c0_i32_0 : i32, i32
  }
  func.func @transform_4(%arg0: i32) -> (i32, i32) {
    %c0_i32 = arith.constant 0 : i32
    %c0_i32_0 = arith.constant 0 : i32
    %c0_i32_1 = arith.constant 0 : i32
    return %c0_i32, %c0_i32_0 : i32, i32
  }
  func.func @transform_5(%arg0: i32) -> (i32, i32) {
    %c0_i32 = arith.constant 0 : i32
    %c0_i32_0 = arith.constant 0 : i32
    %c0_i32_1 = arith.constant 0 : i32
    return %c0_i32, %c0_i32_0 : i32, i32
  }
  func.func @transform_6(%arg0: i32) -> (i32, i32) {
    %c0_i32 = arith.constant 0 : i32
    %c0_i32_0 = arith.constant 0 : i32
    %c0_i32_1 = arith.constant 0 : i32
    return %c0_i32, %c0_i32_0 : i32, i32
  }
  func.func @transform_7(%arg0: i32) -> (i32, i32) {
    %c0_i32 = arith.constant 0 : i32
    %c0_i32_0 = arith.constant 0 : i32
    %c0_i32_1 = arith.constant 0 : i32
    return %c0_i32, %c0_i32_0 : i32, i32
  }
  func.func @transform_8(%arg0: i32) -> (i32, i32) {
    %c0_i32 = arith.constant 0 : i32
    %c0_i32_0 = arith.constant 0 : i32
    %c0_i32_1 = arith.constant 0 : i32
    return %c0_i32, %c0_i32_0 : i32, i32
  }
  func.func @transform_9(%arg0: i32) -> (i32, i32) {
    %c0_i32 = arith.constant 0 : i32
    %c0_i32_0 = arith.constant 0 : i32
    %c0_i32_1 = arith.constant 0 : i32
    return %c0_i32, %c0_i32_0 : i32, i32
  }
  func.func @transform_10(%arg0: i32) -> (i32, i32) {
    %c0_i32 = arith.constant 0 : i32
    %c0_i32_0 = arith.constant 0 : i32
    return %arg0, %c0_i32 : i32, i32
  }
}

</mosaic_0001>

<bundles_post_ra>
// kernel: tpu_custom_call.1
= control target key start
LH: loop header
LB: loop body
LE: loop exit
PB: predicated region body
PF: predicated region fallthrough
CT: control target
= control target key end

     0   :  { %15 = vsyncpa [#allocation5], 0  ;;  %s983_s0 = inlined_call_operand.vmem [shape: f32[3], index: 0, kind: input, shape index: {}]   ;;  %s984_s1 = inlined_call_operand.vmem [shape: f32[8,6], index: 1, kind: input, shape index: {}]   ;;  %s985_s2 = inlined_call_operand.vmem [shape: f32[6,256], index: 2, kind: input, shape index: {}]   ;;  %s986_s3 = inlined_call_operand.vmem [shape: f32[1,256], index: 3, kind: input, shape index: {}]   ;;  %s987_s4 = inlined_call_operand.hbm [shape: bf16[256,128], index: 4, kind: input, shape index: {}]   ;;  %s988_s5 = inlined_call_operand.vmem [shape: f32[1,128], index: 5, kind: input, shape index: {}]   ;;  %s989_s6 = inlined_call_operand.vmem [shape: bf16[128,64], index: 6, kind: input, shape index: {}]   ;;  %s990_s7 = inlined_call_operand.vmem [shape: f32[1,64], index: 7, kind: input, shape index: {}]   ;;  %s991_s8 = inlined_call_operand.vmem [shape: bf16[64,128], index: 8, kind: input, shape index: {}]   ;;  %s992_s9 = inlined_call_operand.vmem [shape: f32[1,128], index: 9, kind: input, shape index: {}]   ;;  %s993_s10 = inlined_call_operand.hbm [shape: f32[8,128], index: 10, kind: output, shape index: {}]  }
   0x1   :  { %16 = vsyncpa [#allocation3], 0 }
   0x2   :  { %17 = vsyncpa [#allocation4], 0  ;;  %s24_s15 = sshll.u32 %s983_s0, 4  ;;  %s25_s15 = int_to_ptr.vmem [resolvable:$true] %s24_s15 }
   0x3   :  { %s765_s16 = scalar_lea.vmem %s25_s15, 16  ;;  %p770_p1 = scmp.lt.s32.totalorder %s25_s15, %s25_s15 }
   0x4   :  { %p766_p0 = scmp.ne.s32.totalorder %s25_s15, %s765_s16  ;;  %p771_p2 = scmp.lt.s32.totalorder %s765_s16, %s765_s16 }
   0x6   :  { %p772_p3 = por %p771_p2, %p770_p1 }
   0x8   :  { %p773_p4 = pnand %p772_p3, %p766_p0 }
   0xa   :  { %776 = shalt.err (!%p773_p4)
}
   0xb   :  { %s823_s17 = smov [#allocation2]   ;;  %s824_s18 = smov [#allocation6]  }
   0xc   :  { %27 = dma.vmem_to_smem %s25_s15, 16, %s823_s17, [#allocation5]  }
   0xd   :  { %s39_s19 = sshll.u32 %s824_s18, 4  ;;  %s40_s19 = int_to_ptr.vmem [resolvable:$true] %s39_s19 }
   0xe   :  { %s785_s20 = scalar_lea.vmem %s40_s19, 2048  ;;  %p790_p6 = scmp.lt.s32.totalorder %s40_s19, %s40_s19 }
   0xf   :  { %p786_p5 = scmp.ne.s32.totalorder %s40_s19, %s785_s20  ;;  %p791_p7 = scmp.lt.s32.totalorder %s785_s20, %s785_s20 }
  0x11   :  { %p792_p8 = por %p791_p7, %p790_p6 }
  0x13   :  { %p793_p9 = pnand %p792_p8, %p786_p5 }
  0x15   :  { %796 = shalt.err (!%p793_p9)
}
  0x16   :  { %s825_s0 = smov 64   ;;  %s826_s21 = smov 4  }
  0x17   :  { %45 = dma.hbm_to_vmem [thread:$0]  %s987_s4, 2048, %s40_s19, [#allocation3], %s825_s0, %s825_s0, %s826_s21  }
  0x18   :  { %817 = dma.done.wait [#allocation5], 16  }
  0x19   :  { %818 = vsyncadd [#allocation5], 4294967280 }
  0x1a   :  { %819 = dma.done.wait [#allocation3], 2048  }
  0x1b   :  { %820 = vsyncadd [#allocation3], 4294965248 }
  0x1c   :  { %62 = sfence }
  0x1d   :  { %v67_v0 = vld [vmem:[%s984_s1] sm:$0xff]  ;;  %v737_v1 = vld [vmem:[#allocation6 + $0x78] sm:$0xff]   ;;  %v827_v2 = vmov 0   ;;  %v828_v3 = vmov 2   ;;  %v739_v5 = vld [vmem:[#allocation6 + $0x70] sm:$0xff]   ;;  %v829_v8 = vmov 1   ;;  %v75_v29 = vlaneseq }
  0x1e   :  { %731 = vset.pattern.permute.xlu0 %v827_v2  ;;  %733 = vset.pattern.permute.xlu1 %v828_v3  ;;  %v738_v4 = vld [vmem:[#allocation6 + $0x38] sm:$0xff]   ;;  %v740_v6 = vld [vmem:[#allocation6 + $0x30] sm:$0xff]   ;;  %v741_v7 = vld [vmem:[#allocation6 + $0x68] sm:$0xff]   ;;  %v830_v9 = vmov 3   ;;  %v831_v12 = vmov 4   ;;  %v832_v13 = vmov 5  }
  0x1f   :  { %71 = vperm.xlu0 %731, %v67_v0   ;;  %125 = vperm.xlu1 %733, %v67_v0   ;;  %v742_v10 = vld [vmem:[#allocation6 + $0x28] sm:$0xff]   ;;  %v743_v11 = vld [vmem:[#allocation6 + $0x60] sm:$0xff]   ;;  %v745_v15 = vld [vmem:[#allocation6 + $0x58] sm:$0xff]   ;;  %v833_v21 = vmov 0.0   ;;  %v76_v30 = vshrl.u32 %v75_v29, 7  ;;  %s64_s1 = sld [smem:[#allocation2]] }
  0x20   :  { %650 = vmatprep.subr.bf16.mxu0 %v737_v1  ;;  %v744_v14 = vld [vmem:[#allocation6 + $0x20] sm:$0xff]   ;;  %v746_v16 = vld [vmem:[#allocation6 + $0x18] sm:$0xff]   ;;  %v747_v17 = vld [vmem:[#allocation6 + $0x50] sm:$0xff]   ;;  %686 = vmatprep.subr.bf16.mxu1 %v833_v21  ;;  %vm834_vm2 = vmmov 0   ;;  %s612_s19 = sld [smem:[#allocation2 + $0x2]]  ;;  %vm550_vm5 = vcmask 523264  }
  0x21   :  { %651 = vmatpush3.bf16.msra.mxu0 %v738_v4  ;;  %v748_v18 = vld [vmem:[#allocation6 + $0x10] sm:$0xff]   ;;  %v753_v19 = vld [vmem:[%s989_s6 + $0x38] sm:$0xff]   ;;  %v749_v20 = vld [vmem:[#allocation6 + $0x48] sm:$0xff]   ;;  %v77_v31 = vsub.s32 0, %v76_v30  ;;  %v81_v32 = vsub.s32 1, %v76_v30  ;;  %702 = vmatprep.mubr.msk.bf16.mxu1 %vm834_vm2, %v833_v21  ;;  %s835_s22 = smov [#allocation7]  }
  0x22   :  { %652 = vmatprep.subr.bf16.mxu0 %v739_v5  ;;  %v750_v22 = vld [vmem:[#allocation6 + $0x8] sm:$0xff]   ;;  %687 = vmatpush3.bf16.msra.mxu1 %v753_v19  ;;  %v754_v23 = vld [vmem:[%s989_s6 + $0x30] sm:$0xff]   ;;  %v751_v24 = vld [vmem:[#allocation6 + $0x40] sm:$0xff]  }
  0x23   :  { %732 = vset.pattern.permute.xlu0 %v829_v8  ;;  %734 = vset.pattern.permute.xlu1 %v830_v9  ;;  %v755_v25 = vld [vmem:[%s989_s6 + $0x28] sm:$0xff]   ;;  %v752_v26 = vld [vmem:[#allocation6] sm:$0xff]   ;;  %v757_v28 = vld [vmem:[%s989_s6 + $0x18] sm:$0xff]  }
  0x24   :  { %104 = vperm.xlu0 %732, %v67_v0   ;;  %146 = vperm.xlu1 %734, %v67_v0   ;;  %v756_v27 = vld [vmem:[%s989_s6 + $0x20] sm:$0xff]   ;;  %v759_v29 = vld [vmem:[%s989_s6 + $0x8] sm:$0xff]  }
  0x25   :  { %653 = vmatpush3.bf16.msra.mxu0 %v740_v6  ;;  %688 = vmatprep.subr.bf16.mxu1 %v833_v21  ;;  %v68_v33 = vld [vmem:[%s985_s2] ss:$8 sm:$0x3]  ;;  %v613_v37 = vld [vmem:[%s985_s2 + $0x1] ss:$8 sm:$0x3] }
  0x26   :  { %654 = vmatprep.subr.bf16.mxu0 %v741_v7  ;;  %689 = vmatpush3.bf16.msra.mxu1 %v754_v23  ;;  %v78_v34 = vrot.slane %v68_v33, %v77_v31  ;;  %v82_v35 = vrot.slane %v68_v33, %v81_v32  ;;  %v87_v36 = vld [vmem:[%s986_s3] sm:$0x3]  ;;  %v614_v42 = vld [vmem:[%s985_s2 + $0x2] ss:$8 sm:$0x3]  ;;  %v111_v45 = vrot.slane %v613_v37, %v77_v31  ;;  %s601_s3 = sshll.u32 %s835_s22, 4  ;;  %s602_s3 = int_to_ptr.vmem [resolvable:$true] %s601_s3 }
  0x27   :  { %690 = vmatprep.subr.bf16.mxu1 %v833_v21  ;;  %v92_v40 = vrot.slane %v87_v36, %v77_v31  ;;  %v96_v41 = vrot.slane %v87_v36, %v81_v32  ;;  %v115_v46 = vrot.slane %v613_v37, %v81_v32  ;;  %v615_v47 = vld [vmem:[%s985_s2 + $0x3] ss:$8 sm:$0x3]  ;;  %v132_v48 = vrot.slane %v614_v42, %v77_v31  ;;  %v616_v50 = vld [vmem:[%s985_s2 + $0x4] ss:$8 sm:$0x3]  ;;  %p802_p11 = scmp.lt.s32.totalorder %s602_s3, %s602_s3 }
  0x28   :  { %735 = vset.pattern.permute.xlu1 %v831_v12  ;;  %736 = vset.pattern.permute.xlu0 %v832_v13  ;;  %v136_v49 = vrot.slane %v614_v42, %v81_v32  ;;  %v617_v51 = vld [vmem:[%s985_s2 + $0x5] ss:$8 sm:$0x3]  ;;  %v153_v53 = vrot.slane %v615_v47, %v77_v31  ;;  %v157_v54 = vrot.slane %v615_v47, %v81_v32 }
  0x29   :  { %167 = vperm.xlu1 %735, %v67_v0   ;;  %188 = vperm.xlu0 %736, %v67_v0   ;;  %v174_v60 = vrot.slane %v616_v50, %v77_v31  ;;  %v178_v61 = vrot.slane %v616_v50, %v81_v32  ;;  %v195_v62 = vrot.slane %v617_v51, %v77_v31  ;;  %v760_v30 = vld [vmem:[%s989_s6] sm:$0xff]   ;;  %v761_v31 = vld [vmem:[%s991_s8 + $0x18] sm:$0xff]  }
  0x2a   :  { %655 = vmatpush3.bf16.msra.mxu0 %v742_v10  ;;  %691 = vmatpush3.bf16.msra.mxu1 %v755_v25  ;;  %v199_v63 = vrot.slane %v617_v51, %v81_v32  ;;  %v762_v32 = vld [vmem:[%s991_s8 + $0x10] sm:$0xff]  }
  0x2b   :  { %656 = vmatprep.subr.bf16.mxu0 %v743_v11  ;;  %692 = vmatprep.subr.bf16.mxu1 %v833_v21 }
  0x2e   :  { %657 = vmatpush3.bf16.msra.mxu0 %v744_v14  ;;  %693 = vmatpush3.bf16.msra.mxu1 %v756_v27 }
  0x2f   :  { %658 = vmatprep.subr.bf16.mxu0 %v745_v15  ;;  %694 = vmatprep.subr.bf16.mxu1 %v833_v21 }
  0x32   :  { %659 = vmatpush3.bf16.msra.mxu0 %v746_v16  ;;  %695 = vmatpush3.bf16.msra.mxu1 %v757_v28  ;;  %v758_v28 = vld [vmem:[%s989_s6 + $0x10] sm:$0xff]   ;;  %s611_s6 = sld [smem:[#allocation2 + $0x1]] }
  0x33   :  { %660 = vmatprep.subr.bf16.mxu0 %v747_v17  ;;  %696 = vmatprep.subr.bf16.mxu1 %v833_v21 }
  0x36   :  { %661 = vmatpush3.bf16.msra.mxu0 %v748_v18  ;;  %v208_v18 = vstv %s64_s1  ;;  %697 = vmatpush3.bf16.msra.mxu1 %v758_v28 }
  0x37   :  { %662 = vmatprep.subr.bf16.mxu0 %v749_v20  ;;  %698 = vmatprep.subr.bf16.mxu1 %v833_v21 }
  0x38   :  { %v391_v37 = vstv %s611_s6 }
  0x3a   :  { %663 = vmatpush3.bf16.msra.mxu0 %v750_v22  ;;  %699 = vmatpush3.bf16.msra.mxu1 %v759_v29 }
  0x3b   :  { %664 = vmatprep.subr.bf16.mxu0 %v751_v24  ;;  %700 = vmatprep.subr.bf16.mxu1 %v833_v21 }
  0x3e   :  { %665 = vmatpush3.bf16.msra.mxu0 %v752_v26  ;;  %701 = vmatpush3.bf16.msra.mxu1 %v760_v30 }
  0x3f   :  { %706 = vmatprep.subr.bf16.mxu0 %v833_v21 }
  0x9a   :  { %v72_v38 = vpop.permute.xlu0 %71  ;;  %v126_v39 = vpop.permute.xlu1 %125 }
  0x9b   :  { %v85_v43 = vmul.f32 %v78_v34, %v72_v38  ;;  %v86_v44 = vmul.f32 %v82_v35, %v72_v38  ;;  %v139_v0 = vmul.f32 %v132_v48, %v126_v39  ;;  %v140_v1 = vmul.f32 %v136_v49, %v126_v39  ;;  %v618_v34 = vld [vmem:[%s988_s5] ss:$0 sm:$0xff] }
  0x9c   :  { %v507_v48 = vstv %s612_s19 }
  0x9d   :  { %v99_v56 = vadd.f32 %v92_v40, %v85_v43  ;;  %v100_v57 = vadd.f32 %v96_v41, %v86_v44  ;;  %v763_v44 = vld [vmem:[%s991_s8 + $0x8] sm:$0xff]  }
  0x9f   :  { %v105_v52 = vpop.permute.xlu0 %104  ;;  %v147_v55 = vpop.permute.xlu1 %146 }
  0xa0   :  { %v118_v58 = vmul.f32 %v111_v45, %v105_v52  ;;  %v119_v59 = vmul.f32 %v115_v46, %v105_v52  ;;  %v160_v6 = vmul.f32 %v153_v53, %v147_v55  ;;  %v161_v7 = vmul.f32 %v157_v54, %v147_v55  ;;  %v764_v45 = vld [vmem:[%s991_s8] sm:$0xff]  }
  0xa1   :  { %v635_v46 = vld [vmem:[%s990_s7] ss:$0 sm:$0xff]  ;;  %s797_s7 = scalar_lea.vmem %s602_s3, 128 }
  0xa2   :  { %v120_v2 = vadd.f32 %v118_v58, %v99_v56  ;;  %v121_v3 = vadd.f32 %v119_v59, %v100_v57  ;;  %v644_v55 = vld [vmem:[%s992_s9] ss:$0 sm:$0xff]  ;;  %p798_p10 = scmp.ne.s32.totalorder %s602_s3, %s797_s7  ;;  %p803_p12 = scmp.lt.s32.totalorder %s797_s7, %s797_s7 }
  0xa4   :  { %v141_v4 = vadd.f32 %v139_v0, %v120_v2  ;;  %v142_v5 = vadd.f32 %v140_v1, %v121_v3  ;;  %v168_v8 = vpop.permute.xlu1 %167  ;;  %v189_v9 = vpop.permute.xlu0 %188  ;;  %p804_p13 = por %p803_p12, %p802_p11 }
  0xa5   :  { %v181_v10 = vmul.f32 %v174_v60, %v168_v8  ;;  %v182_v11 = vmul.f32 %v178_v61, %v168_v8  ;;  %v202_v14 = vmul.f32 %v195_v62, %v189_v9  ;;  %v203_v15 = vmul.f32 %v199_v63, %v189_v9 }
  0xa6   :  { %v162_v12 = vadd.f32 %v160_v6, %v141_v4  ;;  %v163_v13 = vadd.f32 %v161_v7, %v142_v5  ;;  %p805_p0 = pnand %p804_p13, %p798_p10 }
  0xa8   :  { %v183_v16 = vadd.f32 %v181_v10, %v162_v12  ;;  %v184_v17 = vadd.f32 %v182_v11, %v163_v13 }
  0xaa   :  { %v204_v19 = vadd.f32 %v202_v14, %v183_v16  ;;  %v205_v20 = vadd.f32 %v203_v15, %v184_v17 }
  0xac   :  { %vm207_vm0 = vcmp.ge.f32.partialorder %v205_v20, 0.0  ;;  %v209_v22 = vmul.f32 %v208_v18, %v204_v19  ;;  %v210_v23 = vmul.f32 %v208_v18, %v205_v20  ;;  %vm206_vm1 = vcmp.ge.f32.partialorder %v204_v19, 0.0 }
  0xae   :  { %v212_v24 = vsel %vm207_vm0, %v205_v20, %v210_v23  ;;  %v211_v25 = vsel %vm206_vm1, %v204_v19, %v209_v22 }
  0xaf   :  { %v214_v26 = vpack.c.bf16 %v212_v24, %v212_v24  ;;  %v213_v27 = vpack.c.bf16 %v211_v25, %v211_v25 }
  0xb1   :  { %382 = vmatprep.mubr.bf16.mxu0 %v214_v26 }
  0xb2   :  { %383 = vmatmul.mubr.bf16.vlgmr.msra.gmra.mxu0 %v213_v27 }
  0xb3   :  { %714 = vmatprep.mubr.msk.bf16.mxu0 %vm834_vm2, %v833_v21  ;;  %707 = vmatpush3.bf16.msra.mxu0 %v761_v31 }
  0xb4   :  { %708 = vmatprep.subr.bf16.mxu0 %v833_v21 }
  0xb7   :  { %709 = vmatpush3.bf16.msra.mxu0 %v762_v32 }
  0xb8   :  { %710 = vmatprep.subr.bf16.mxu0 %v833_v21 }
  0xbb   :  { %711 = vmatpush3.bf16.msra.mxu0 %v763_v44 }
  0xbc   :  { %712 = vmatprep.subr.bf16.mxu0 %v833_v21 }
  0xbf   :  { %713 = vmatpush3.bf16.msra.mxu0 %v764_v45 }
 0x172   :  { %v666_v33 = vpop.f32.mrf.mxu0 }
 0x174   :  { %v667_v35 = vpop.f32.mrf.mxu0 }
 0x175   :  { %v668_v36 = vadd.f32 %v667_v35, %v666_v33 }
 0x176   :  { %v669_v38 = vpop.f32.mrf.mxu0 }
 0x177   :  { %v385_v39 = vadd.f32 %v668_v36, %v618_v34 }
 0x178   :  { %v670_v40 = vpop.f32.mrf.mxu0 }
 0x179   :  { %v392_v41 = vmul.f32 %v391_v37, %v385_v39  ;;  %vm390_vm3 = vcmp.ge.f32.partialorder %v385_v39, 0.0 }
 0x17b   :  { %v393_v42 = vsel %vm390_vm3, %v385_v39, %v392_v41 }
 0x17c   :  { %v394_v43 = vpack.c.bf16 %v393_v42, %v393_v42 }
 0x17e   :  { %703 = vmatmul.mubr.bf16.vlgmr.msra.gmra.mxu1 %v394_v43 }
 0x23e   :  { %v500_v47 = vpop.f32.mrf.mxu1 }
 0x23f   :  { %v501_v49 = vadd.f32 %v635_v46, %v500_v47 }
 0x240   :  { %v704_v50 = vpop.f32.mrf.mxu1 }
 0x241   :  { %vm506_vm4 = vcmp.ge.f32.partialorder %v501_v49, 0.0  ;;  %v508_v51 = vmul.f32 %v507_v48, %v501_v49 }
 0x242   :  { %v503_v52 = vpop.f32.mrf.mxu1 }
 0x243   :  { %v509_v53 = vsel %vm506_vm4, %v501_v49, %v508_v51 }
 0x244   :  { %v510_v21 = vpack.c.bf16 %v509_v53, %v509_v53  ;;  %v705_v54 = vpop.f32.mrf.mxu1 }
 0x246   :  { %715 = vmatmul.mubr.msk.bf16.vlgmr.msra.gmra.mxu0 %vm550_vm5, %v510_v21 }
 0x306   :  { %v588_v56 = vpop.f32.mrf.mxu0 }
 0x307   :  { %v589_v57 = vadd.f32 %v644_v55, %v588_v56 }
 0x308   :  { %v716_v58 = vpop.f32.mrf.mxu0 }
 0x309   :  { %594 = vst [vmem:[#allocation7] sm:$0xff] %v589_v57 }
 0x30a   :  { %v591_v59 = vpop.f32.mrf.mxu0 }
 0x30b   :  { %808 = shalt.err (!%p805_p0)
}
 0x30c   :  { %604 = dma.vmem_to_hbm [thread:$0]  %s602_s3, 128, %s993_s10, [#allocation4]   ;;  %v717_v60 = vpop.f32.mrf.mxu0 }
 0x30d   :  { %821 = dma.done.wait [#allocation4], 128  }
 0x30e   :  { %822 = vsyncadd [#allocation4], 4294967168 }
 0x30f   :  { %608 = vsyncpa [#allocation3], 1 }
 0x310   :  { %609 = vsyncpa [#allocation4], 1 }
 0x311   :  { %610 = vsyncpa [#allocation5], 1 }

</bundles_post_ra>
